<compile_context>
chip_gen: v7x
topology: tpu7x:2x2x1
jax: 0.10.0
libtpu: 0.0.40
codegen_flags: <defaults>
</compile_context>

<pallas_src>
import functools
import math

import jax
import jax.numpy as jnp
from jax import lax
from jax.experimental import pallas as pl
from jax.experimental.pallas import tpu as pltpu


def _attention_kernel(q_ref, k_ref, v_ref, wq_ref, wk_ref, wv_ref,
                      attn_ref, scores_ref, *, B, S, E, d):
    # ---- Projections: three lane-aligned 2D MXU dots, f32 accumulate. ----
    # (B,S,E)->(B*S,E) is a layout no-op (S is a sublane multiple of 8).
    q2 = q_ref[...].reshape(B * S, E)
    k2 = k_ref[...].reshape(B * S, E)
    v2 = v_ref[...].reshape(B * S, E)

    Q = jnp.dot(q2, wq_ref[...], preferred_element_type=jnp.float32)
    K = jnp.dot(k2, wk_ref[...], preferred_element_type=jnp.float32)
    V = jnp.dot(v2, wv_ref[...], preferred_element_type=jnp.float32)

    # Scale Q (S*d elements) instead of the (S,S) score matrix.
    Q = Q * (1.0 / math.sqrt(d))

    Q = Q.reshape(B, S, d)
    K = K.reshape(B, S, d)
    V = V.reshape(B, S, d)

    # ---- Batched Q @ K^T: batch dim 0, contract head dim of both operands
    # (transpose-free RHS feed), one MXU stream instead of a Python loop. ----
    s = lax.dot_general(Q, K, (((2,), (2,)), ((0,), (0,))),
                        preferred_element_type=jnp.float32)        # (B,S,S)

    # ---- Numerically stable softmax (f32); divide -> EUP reciprocal. ----
    s = s - jnp.max(s, axis=-1, keepdims=True)
    e = jnp.exp(s)
    denom = jnp.sum(e, axis=-1, keepdims=True)                     # (B,S,1) >= 1
    inv = pl.reciprocal(denom, approx=True)
    inv = inv * (2.0 - denom * inv)          # one Newton step -> ~f32 accuracy
    p = e * inv                                                    # (B,S,S)

    # ---- Batched P @ V. ----
    attn = lax.dot_general(p, V, (((2,), (1,)), ((0,), (0,))),
                           preferred_element_type=jnp.float32)     # (B,S,d)

    # Write each result directly to its own output ref (no concat/split).
    attn_ref[...] = attn.astype(attn_ref.dtype)
    scores_ref[...] = p.astype(scores_ref.dtype)


def attention_pallas(query, key, value, wq, wk, wv):
    """query/key/value: (B, S, E); wq/wk/wv: (E, d).  Returns (attn, scores)."""
    B, S, E = query.shape
    d = wq.shape[1]
    dtype = query.dtype

    kernel = functools.partial(_attention_kernel, B=B, S=S, E=E, d=d)

    attn, scores = pl.pallas_call(
        kernel,
        out_shape=(
            jax.ShapeDtypeStruct((B, S, d), dtype),
            jax.ShapeDtypeStruct((B, S, S), dtype),
        ),
        grid_spec=pltpu.PrefetchScalarGridSpec(
            num_scalar_prefetch=0,
            grid=(1,),
            in_specs=[
                pl.BlockSpec((B, S, E), lambda i: (0, 0, 0)),
                pl.BlockSpec((B, S, E), lambda i: (0, 0, 0)),
                pl.BlockSpec((B, S, E), lambda i: (0, 0, 0)),
                pl.BlockSpec((E, d), lambda i: (0, 0)),
                pl.BlockSpec((E, d), lambda i: (0, 0)),
                pl.BlockSpec((E, d), lambda i: (0, 0)),
            ],
            out_specs=[
                pl.BlockSpec((B, S, d), lambda i: (0, 0, 0)),
                pl.BlockSpec((B, S, S), lambda i: (0, 0, 0)),
            ],
        ),
        compiler_params=pltpu.CompilerParams(
            dimension_semantics=("arbitrary",)),
    )(query, key, value, wq, wk, wv)

    return attn, scores


def _reference(query, key, value, wq, wk, wv):
    Q = query @ wq
    K = key @ wk
    V = value @ wv
    s = jnp.einsum("bqd,bkd->bqk", Q, K) / math.sqrt(Q.shape[-1])
    p = jax.nn.softmax(s, axis=-1)
    return jnp.einsum("bqk,bkd->bqd", p, V), p


if __name__ == "__main__":
    # Module config: embed_dim=32, num_heads=4 -> attention_dim=8
    embed_dim, num_heads = 32, 4
    attention_dim = embed_dim // num_heads
    B, S = 2, 8

    key0 = jax.random.PRNGKey(0)
    kq, kk, kv, kwq, kwk, kwv = jax.random.split(key0, 6)

    query = jax.random.normal(kq, (B, S, embed_dim), dtype=jnp.float32)
    key_ = jax.random.normal(kk, (B, S, embed_dim), dtype=jnp.float32)
    value = jax.random.normal(kv, (B, S, embed_dim), dtype=jnp.float32)

    # Deterministic nn.Linear-style init: U(-1/sqrt(E), 1/sqrt(E)); stored (E,d).
    bound = 1.0 / math.sqrt(embed_dim)
    wq = jax.random.uniform(kwq, (embed_dim, attention_dim), jnp.float32, -bound, bound)
    wk = jax.random.uniform(kwk, (embed_dim, attention_dim), jnp.float32, -bound, bound)
    wv = jax.random.uniform(kwv, (embed_dim, attention_dim), jnp.float32, -bound, bound)

    attn, scores = attention_pallas(query, key_, value, wq, wk, wv)
    jax.block_until_ready((attn, scores))

    ref_attn, ref_scores = _reference(query, key_, value, wq, wk, wv)
    # 1e-4 tolerance is intentional: the EUP approximate reciprocal with one
    # Newton refinement is ~1e-7 accurate, leaving wide margin.
    assert jnp.allclose(attn, ref_attn, atol=1e-4, rtol=1e-4)
    assert jnp.allclose(scores, ref_scores, atol=1e-4, rtol=1e-4)

    print("KERNEL_OK")
</pallas_src>

<mosaic_0001>
module attributes {stable_mosaic.version = 11 : i64} {
  func.func @_attention_kernel(%arg0: i32, %arg1: memref<2x8x32xf32, #tpu.memory_space<vmem>>, %arg2: memref<2x8x32xf32, #tpu.memory_space<vmem>>, %arg3: memref<2x8x32xf32, #tpu.memory_space<vmem>>, %arg4: memref<32x8xf32, #tpu.memory_space<vmem>>, %arg5: memref<32x8xf32, #tpu.memory_space<vmem>>, %arg6: memref<32x8xf32, #tpu.memory_space<vmem>>, %arg7: memref<2x8x8xf32, #tpu.memory_space<vmem>>, %arg8: memref<2x8x8xf32, #tpu.memory_space<vmem>>) attributes {dimension_semantics = [#tpu.dimension_semantics<arbitrary>], iteration_bounds = array<i64: 1>, scalar_prefetch = 0 : i64, scratch_operands = 0 : i64, tpu.core_type = #tpu.core_type<tc>, window_params = [{pipeline_mode = #tpu.pipeline_mode<synchronous>, transform_indices = @transform_0, window_bounds = array<i64: 2, 8, 32>}, {pipeline_mode = #tpu.pipeline_mode<synchronous>, transform_indices = @transform_1, window_bounds = array<i64: 2, 8, 32>}, {pipeline_mode = #tpu.pipeline_mode<synchronous>, transform_indices = @transform_2, window_bounds = array<i64: 2, 8, 32>}, {pipeline_mode = #tpu.pipeline_mode<synchronous>, transform_indices = @transform_3, window_bounds = array<i64: 32, 8>}, {pipeline_mode = #tpu.pipeline_mode<synchronous>, transform_indices = @transform_4, window_bounds = array<i64: 32, 8>}, {pipeline_mode = #tpu.pipeline_mode<synchronous>, transform_indices = @transform_5, window_bounds = array<i64: 32, 8>}, {pipeline_mode = #tpu.pipeline_mode<synchronous>, transform_indices = @transform_6, window_bounds = array<i64: 2, 8, 8>}, {pipeline_mode = #tpu.pipeline_mode<synchronous>, transform_indices = @transform_7, window_bounds = array<i64: 2, 8, 8>}]} {
    %c0 = arith.constant 0 : index
    %c0_0 = arith.constant 0 : index
    %c0_1 = arith.constant 0 : index
    %0 = vector.load %arg1[%c0, %c0_0, %c0_1] : memref<2x8x32xf32, #tpu.memory_space<vmem>>, vector<2x8x32xf32>
    %1 = vector.shape_cast %0 : vector<2x8x32xf32> to vector<16x32xf32>
    %c0_2 = arith.constant 0 : index
    %c0_3 = arith.constant 0 : index
    %c0_4 = arith.constant 0 : index
    %2 = vector.load %arg2[%c0_2, %c0_3, %c0_4] : memref<2x8x32xf32, #tpu.memory_space<vmem>>, vector<2x8x32xf32>
    %3 = vector.shape_cast %2 : vector<2x8x32xf32> to vector<16x32xf32>
    %c0_5 = arith.constant 0 : index
    %c0_6 = arith.constant 0 : index
    %c0_7 = arith.constant 0 : index
    %4 = vector.load %arg3[%c0_5, %c0_6, %c0_7] : memref<2x8x32xf32, #tpu.memory_space<vmem>>, vector<2x8x32xf32>
    %5 = vector.shape_cast %4 : vector<2x8x32xf32> to vector<16x32xf32>
    %c0_8 = arith.constant 0 : index
    %c0_9 = arith.constant 0 : index
    %6 = vector.load %arg4[%c0_8, %c0_9] : memref<32x8xf32, #tpu.memory_space<vmem>>, vector<32x8xf32>
    %cst = arith.constant dense<0.000000e+00> : vector<16x8xf32>
    %7 = tpu.matmul %1, %6, %cst {dimension_numbers = #tpu.dot_dimension_numbers<[1], [0], [0], [1], [0, 0, 1, 1], [], []>} : vector<16x32xf32>, vector<32x8xf32>, vector<16x8xf32> -> vector<16x8xf32>
    %c0_10 = arith.constant 0 : index
    %c0_11 = arith.constant 0 : index
    %8 = vector.load %arg5[%c0_10, %c0_11] : memref<32x8xf32, #tpu.memory_space<vmem>>, vector<32x8xf32>
    %cst_12 = arith.constant dense<0.000000e+00> : vector<16x8xf32>
    %9 = tpu.matmul %3, %8, %cst_12 {dimension_numbers = #tpu.dot_dimension_numbers<[1], [0], [0], [1], [0, 0, 1, 1], [], []>} : vector<16x32xf32>, vector<32x8xf32>, vector<16x8xf32> -> vector<16x8xf32>
    %c0_13 = arith.constant 0 : index
    %c0_14 = arith.constant 0 : index
    %10 = vector.load %arg6[%c0_13, %c0_14] : memref<32x8xf32, #tpu.memory_space<vmem>>, vector<32x8xf32>
    %cst_15 = arith.constant dense<0.000000e+00> : vector<16x8xf32>
    %11 = tpu.matmul %5, %10, %cst_15 {dimension_numbers = #tpu.dot_dimension_numbers<[1], [0], [0], [1], [0, 0, 1, 1], [], []>} : vector<16x32xf32>, vector<32x8xf32>, vector<16x8xf32> -> vector<16x8xf32>
    %cst_16 = arith.constant 0.353553385 : f32
    %12 = vector.broadcast %cst_16 : f32 to vector<16x8xf32>
    %13 = arith.mulf %7, %12 : vector<16x8xf32>
    %14 = vector.shape_cast %13 : vector<16x8xf32> to vector<2x8x8xf32>
    %15 = vector.shape_cast %9 : vector<16x8xf32> to vector<2x8x8xf32>
    %16 = vector.shape_cast %11 : vector<16x8xf32> to vector<2x8x8xf32>
    %cst_17 = arith.constant dense<0.000000e+00> : vector<2x8x8xf32>
    %17 = tpu.matmul %14, %15, %cst_17 {dimension_numbers = #tpu.dot_dimension_numbers<[2], [2], [1], [1], [0, 0, 0, 1, 1, 1], [0], [0]>} : vector<2x8x8xf32>, vector<2x8x8xf32>, vector<2x8x8xf32> -> vector<2x8x8xf32>
    %cst_18 = arith.constant dense<0xFF800000> : vector<2x8xf32>
    %18 = vector.multi_reduction <maximumf>, %17, %cst_18 [2] : vector<2x8x8xf32> to vector<2x8xf32>
    %19 = vector.shape_cast %18 : vector<2x8xf32> to vector<2x8x1xf32>
    %20 = vector.broadcast %19 : vector<2x8x1xf32> to vector<2x8x8xf32>
    %21 = arith.subf %17, %20 : vector<2x8x8xf32>
    %22 = math.exp %21 : vector<2x8x8xf32>
    %cst_19 = arith.constant dense<0.000000e+00> : vector<2x8xf32>
    %23 = vector.multi_reduction <add>, %22, %cst_19 [2] : vector<2x8x8xf32> to vector<2x8xf32>
    %24 = vector.shape_cast %23 : vector<2x8xf32> to vector<2x8x1xf32>
    %25 = tpu.reciprocal %24 {approx = true} : vector<2x8x1xf32> -> vector<2x8x1xf32>
    %26 = arith.mulf %24, %25 : vector<2x8x1xf32>
    %cst_20 = arith.constant 2.000000e+00 : f32
    %27 = vector.broadcast %cst_20 : f32 to vector<2x8x1xf32>
    %28 = arith.subf %27, %26 : vector<2x8x1xf32>
    %29 = arith.mulf %25, %28 : vector<2x8x1xf32>
    %30 = vector.broadcast %29 : vector<2x8x1xf32> to vector<2x8x8xf32>
    %31 = arith.mulf %22, %30 : vector<2x8x8xf32>
    %cst_21 = arith.constant dense<0.000000e+00> : vector<2x8x8xf32>
    %32 = tpu.matmul %31, %16, %cst_21 {dimension_numbers = #tpu.dot_dimension_numbers<[2], [1], [1], [2], [0, 0, 0, 1, 1, 2], [0], [0]>} : vector<2x8x8xf32>, vector<2x8x8xf32>, vector<2x8x8xf32> -> vector<2x8x8xf32>
    %c0_22 = arith.constant 0 : index
    %c0_23 = arith.constant 0 : index
    %c0_24 = arith.constant 0 : index
    %33 = vector.load %arg7[%c0_22, %c0_23, %c0_24] : memref<2x8x8xf32, #tpu.memory_space<vmem>>, vector<2x8x8xf32>
    tpu.vector_store %arg7[%c0_22, %c0_23, %c0_24], %32 {strides = array<i32>} : memref<2x8x8xf32, #tpu.memory_space<vmem>>, vector<2x8x8xf32>,
    %c0_25 = arith.constant 0 : index
    %c0_26 = arith.constant 0 : index
    %c0_27 = arith.constant 0 : index
    %34 = vector.load %arg8[%c0_25, %c0_26, %c0_27] : memref<2x8x8xf32, #tpu.memory_space<vmem>>, vector<2x8x8xf32>
    tpu.vector_store %arg8[%c0_25, %c0_26, %c0_27], %31 {strides = array<i32>} : memref<2x8x8xf32, #tpu.memory_space<vmem>>, vector<2x8x8xf32>,
    return
  }
  func.func @transform_0(%arg0: i32) -> (i32, i32, i32) {
    %c0_i32 = arith.constant 0 : i32
    %c0_i32_0 = arith.constant 0 : i32
    %c0_i32_1 = arith.constant 0 : i32
    %c0_i32_2 = arith.constant 0 : i32
    return %c0_i32, %c0_i32_0, %c0_i32_1 : i32, i32, i32
  }
  func.func @transform_1(%arg0: i32) -> (i32, i32, i32) {
    %c0_i32 = arith.constant 0 : i32
    %c0_i32_0 = arith.constant 0 : i32
    %c0_i32_1 = arith.constant 0 : i32
    %c0_i32_2 = arith.constant 0 : i32
    return %c0_i32, %c0_i32_0, %c0_i32_1 : i32, i32, i32
  }
  func.func @transform_2(%arg0: i32) -> (i32, i32, i32) {
    %c0_i32 = arith.constant 0 : i32
    %c0_i32_0 = arith.constant 0 : i32
    %c0_i32_1 = arith.constant 0 : i32
    %c0_i32_2 = arith.constant 0 : i32
    return %c0_i32, %c0_i32_0, %c0_i32_1 : i32, i32, i32
  }
  func.func @transform_3(%arg0: i32) -> (i32, i32) {
    %c0_i32 = arith.constant 0 : i32
    %c0_i32_0 = arith.constant 0 : i32
    %c0_i32_1 = arith.constant 0 : i32
    return %c0_i32, %c0_i32_0 : i32, i32
  }
  func.func @transform_4(%arg0: i32) -> (i32, i32) {
    %c0_i32 = arith.constant 0 : i32
    %c0_i32_0 = arith.constant 0 : i32
    %c0_i32_1 = arith.constant 0 : i32
    return %c0_i32, %c0_i32_0 : i32, i32
  }
  func.func @transform_5(%arg0: i32) -> (i32, i32) {
    %c0_i32 = arith.constant 0 : i32
    %c0_i32_0 = arith.constant 0 : i32
    %c0_i32_1 = arith.constant 0 : i32
    return %c0_i32, %c0_i32_0 : i32, i32
  }
  func.func @transform_6(%arg0: i32) -> (i32, i32, i32) {
    %c0_i32 = arith.constant 0 : i32
    %c0_i32_0 = arith.constant 0 : i32
    %c0_i32_1 = arith.constant 0 : i32
    %c0_i32_2 = arith.constant 0 : i32
    return %c0_i32, %c0_i32_0, %c0_i32_1 : i32, i32, i32
  }
  func.func @transform_7(%arg0: i32) -> (i32, i32, i32) {
    %c0_i32 = arith.constant 0 : i32
    %c0_i32_0 = arith.constant 0 : i32
    %c0_i32_1 = arith.constant 0 : i32
    %c0_i32_2 = arith.constant 0 : i32
    return %c0_i32, %c0_i32_0, %c0_i32_1 : i32, i32, i32
  }
}

</mosaic_0001>

<bundles_post_ra>
// kernel: tpu_custom_call.1
= control target key start
LH: loop header
LB: loop body
LE: loop exit
PB: predicated region body
PF: predicated region fallthrough
CT: control target
= control target key end

     0   :  { %13 = vsyncpa [#allocation3], 0  ;;  %vm37_vm0 = vcmask 261120   ;;  %s979_s0 = inlined_call_operand.vmem [shape: f32[2,8,32], index: 0, kind: input, shape index: {}]   ;;  %s980_s1 = inlined_call_operand.vmem [shape: f32[2,8,32], index: 1, kind: input, shape index: {}]   ;;  %s981_s2 = inlined_call_operand.vmem [shape: f32[2,8,32], index: 2, kind: input, shape index: {}]   ;;  %s982_s3 = inlined_call_operand.vmem [shape: f32[32,8], index: 3, kind: input, shape index: {}]   ;;  %s983_s4 = inlined_call_operand.vmem [shape: f32[32,8], index: 4, kind: input, shape index: {}]   ;;  %s984_s5 = inlined_call_operand.vmem [shape: f32[32,8], index: 5, kind: input, shape index: {}]   ;;  %s985_s6 = inlined_call_operand.hbm [shape: f32[2,8,8], index: 6, kind: output, shape index: {0}]   ;;  %s986_s7 = inlined_call_operand.hbm [shape: f32[2,8,8], index: 7, kind: output, shape index: {1}]  }
   0x1   :  { %v119_v0 = vld [vmem:[%s983_s4] sm:$0xff]  ;;  %v120_v1 = vld [vmem:[%s983_s4 + $0x8] sm:$0xff]  ;;  %v121_v5 = vld [vmem:[%s983_s4 + $0x10] sm:$0xff] }
   0x2   :  { %v33_v2 = vld [vmem:[%s982_s3] sm:$0xff]  ;;  %v753_v3 = vpack.c.bf16 %v120_v1, %v119_v0  ;;  %v34_v4 = vld [vmem:[%s982_s3 + $0x8] sm:$0xff]  ;;  %v122_v6 = vld [vmem:[%s983_s4 + $0x18] sm:$0xff] }
   0x3   :  { %v745_v7 = vpack.c.bf16 %v34_v4, %v33_v2  ;;  %v757_v8 = vpack.c.bf16 %v122_v6, %v121_v5  ;;  %v35_v9 = vld [vmem:[%s982_s3 + $0x10] sm:$0xff]  ;;  %v36_v10 = vld [vmem:[%s982_s3 + $0x18] sm:$0xff]  ;;  %v29_v11 = vld [vmem:[%s980_s1] sm:$0xff] }
   0x4   :  { %754 = vmatprep.subr.bf16.mxu1 %v753_v3  ;;  %v749_v12 = vpack.c.bf16 %v36_v10, %v35_v9  ;;  %711 = vmatprep.mubr.msk.f32.mxu1 %vm37_vm0, %v29_v11  ;;  %v27_v13 = vld [vmem:[%s979_s0] sm:$0xff] }
   0x5   :  { %746 = vmatprep.subr.bf16.mxu0 %v745_v7  ;;  %756 = vmatpush3.bf16.msra.mxu1 %v753_v3 }
   0x6   :  { %14 = vsyncpa [#allocation5], 0  ;;  %748 = vmatpush3.bf16.msra.mxu0 %v745_v7  ;;  %758 = vmatprep.subr.bf16.mxu1 %v757_v8  ;;  %v30_v14 = vld [vmem:[%s980_s1 + $0x8] sm:$0xff]  ;;  %v831_v16 = vmov 0.0   ;;  %vm832_vm1 = vmmov 0   ;;  %vm291_vm2 = vcmask 64512  }
   0x7   :  { %750 = vmatprep.subr.bf16.mxu0 %v749_v12  ;;  %700 = vmatprep.mubr.msk.f32.mxu0 %vm37_vm0, %v27_v13  ;;  %v28_v15 = vld [vmem:[%s979_s0 + $0x8] sm:$0xff]  ;;  %v204_v23 = vld [vmem:[%s984_s5] sm:$0xff]  ;;  %v206_v25 = vld [vmem:[%s984_s5 + $0x10] sm:$0xff] }
   0x8   :  { %v205_v24 = vld [vmem:[%s984_s5 + $0x8] sm:$0xff]  ;;  %v207_v27 = vld [vmem:[%s984_s5 + $0x18] sm:$0xff]  ;;  %v31_v28 = vld [vmem:[%s981_s2] sm:$0xff] }
   0x9   :  { %760 = vmatpush3.bf16.msra.mxu1 %v757_v8  ;;  %v761_v26 = vpack.c.bf16 %v205_v24, %v204_v23  ;;  %v765_v29 = vpack.c.bf16 %v207_v27, %v206_v25  ;;  %v32_v30 = vld [vmem:[%s981_s2 + $0x8] sm:$0xff]  ;;  %s833_s2 = smov [#allocation4]  }
   0xa   :  { %752 = vmatpush3.bf16.msra.mxu0 %v749_v12  ;;  %725 = vmatprep.subr.mxu1 %v831_v16  ;;  %s639_s5 = sshll.u32 %s833_s2, 4  ;;  %s640_s5 = int_to_ptr.vmem [resolvable:$true] %s639_s5 }
   0xb   :  { %762 = vmatprep.subr.bf16.mxu0 %v761_v26  ;;  %s783_s10 = scalar_lea.vmem %s640_s5, 256  ;;  %p788_p1 = scmp.lt.s32.totalorder %s640_s5, %s640_s5 }
   0xc   :  { %712 = vmatmul.mubr.msk.f32.vlgmr.msra.gmra.mrb[0].mxu1 %vm37_vm0, %v30_v14  ;;  %p784_p0 = scmp.ne.s32.totalorder %s640_s5, %s783_s10  ;;  %p789_p2 = scmp.lt.s32.totalorder %s783_s10, %s783_s10 }
   0xd   :  { %701 = vmatmul.mubr.msk.f32.vlgmr.msra.gmra.mrb[0].mxu0 %vm37_vm0, %v28_v15  ;;  %727 = vmatprep.mubr.msk.f32.mxu1 %vm832_vm1, %v831_v16 }
   0xe   :  { %722 = vmatprep.mubr.msk.f32.mxu0 %vm37_vm0, %v31_v28  ;;  %764 = vmatpush3.bf16.msra.mxu0 %v761_v26  ;;  %p790_p3 = por %p789_p2, %p788_p1 }
   0xf   :  { %766 = vmatprep.subr.bf16.mxu0 %v765_v29 }
  0x10   :  { %p791_p4 = pnand %p790_p3, %p784_p0 }
  0x12   :  { %768 = vmatpush3.bf16.msra.mxu0 %v765_v29 }
  0x13   :  { %735 = vmatprep.subr.mxu0 %v831_v16 }
  0x15   :  { %723 = vmatmul.mubr.msk.f32.vlgmr.msra.gmra.mrb[2].mxu0 %vm37_vm0, %v32_v30 }
  0x16   :  { %737 = vmatprep.mubr.msk.f32.mxu0 %vm832_vm1, %v831_v16 }
  0xdf   :  { %v713_v17 = vpop.f32.mrb[0].mxu1 }
  0xe0   :  { %v702_v18 = vpop.f32.mrb[0].mxu0  ;;  %v195_v19 = vpop.f32.mrb[1].mxu1 }
  0xe1   :  { %v110_v20 = vpop.f32.mrb[1].mxu0  ;;  %726 = vmatpush3.xpose.msk.msra.mxu1 %vm291_vm2, %v195_v19  ;;  %v290_v22 = vmul.f32 0.35355338, %v702_v18 }
  0xe2   :  { %v289_v21 = vmul.f32 0.35355338, %v110_v20  ;;  %730 = vmatprep.subr.mxu1 %v831_v16 }
  0xe4   :  { %728 = vmatmul.mubr.msk.f32.vlgmr.msra.gmra.mrb[2].mxu1 %vm291_vm2, %v289_v21 }
  0xe5   :  { %731 = vmatpush3.xpose.msk.msra.mxu1 %vm291_vm2, %v713_v17  ;;  %732 = vmatprep.mubr.msk.f32.mxu1 %vm832_vm1, %v831_v16 }
  0xe6   :  { %740 = vmatprep.subr.mxu1 %v831_v16 }
  0xe8   :  { %733 = vmatmul.mubr.msk.f32.vlgmr.msra.gmra.mrb[4].mxu1 %vm291_vm2, %v290_v22  ;;  %v724_v47 = vpop.f32.mrb[2].mxu0 }
  0xe9   :  { %742 = vmatprep.mubr.msk.f32.mxu1 %vm832_vm1, %v831_v16  ;;  %v280_v48 = vpop.f32.mrb[3].mxu0  ;;  %741 = vmatpush3.msra.mxu1 %v724_v47 }
  0xea   :  { %736 = vmatpush3.msra.mxu0 %v280_v48 }
 0x1b7   :  { %v364_v31 = vpop.f32.mrb[2].mxu1 }
 0x1b8   :  { %v729_v32 = vpop.f32.mrb[3].mxu1  ;;  %v444_v33 = vsel %vm291_vm2, %v364_v31, -inf }
 0x1b9   :  { %445 = vmax.xlane.f32.xlu0 %v444_v33 }
 0x1bb   :  { %v440_v34 = vpop.f32.mrb[4].mxu1 }
 0x1bc   :  { %v734_v35 = vpop.f32.mrb[5].mxu1  ;;  %v447_v36 = vsel %vm291_vm2, %v440_v34, -inf }
 0x1bd   :  { %448 = vmax.xlane.f32.xlu0 %v447_v36 }
 0x246   :  { %v446_v37 = vpop.xlane.xlu0 %445 }
 0x247   :  { %v450_v38 = vsub.f32 %v364_v31, %v446_v37 }
 0x249   :  { %v452_v39 = vmul.f32 1.442695, %v450_v38 }
 0x24a   :  { %v449_v40 = vpop.xlane.xlu0 %448 }
 0x24b   :  { %775 = vpow2.f32 %v452_v39  ;;  %v451_v41 = vsub.f32 %v440_v34, %v449_v40 }
 0x24d   :  { %v454_v42 = vmul.f32 1.442695, %v451_v41 }
 0x24f   :  { %777 = vpow2.f32 %v454_v42 }
 0x255   :  { %v776_v43 = vpop.eup %775 }
 0x256   :  { %v456_v44 = vsel %vm291_vm2, %v776_v43, 0.0 }
 0x257   :  { %457 = vadd.xlane.f32.xlu1 %v456_v44 }
 0x259   :  { %v778_v45 = vpop.eup %777 }
 0x25a   :  { %v459_v46 = vsel %vm291_vm2, %v778_v45, 0.0 }
 0x25b   :  { %460 = vadd.xlane.f32.xlu1 %v459_v46 }
 0x2e4   :  { %v458_v49 = vpop.xlane.xlu1 %457 }
 0x2e5   :  { %779 = vrcp.f32 %v458_v49 }
 0x2e8   :  { %v461_v50 = vpop.xlane.xlu1 %460 }
 0x2e9   :  { %781 = vrcp.f32 %v461_v50 }
 0x2ef   :  { %v780_v51 = vpop.eup %779 }
 0x2f0   :  { %v464_v52 = vmul.f32 %v780_v51, %v458_v49 }
 0x2f2   :  { %v466_v53 = vsub.f32 2.0, %v464_v52 }
 0x2f3   :  { %v782_v54 = vpop.eup %781 }
 0x2f4   :  { %v468_v55 = vmul.f32 %v780_v51, %v466_v53  ;;  %v465_v56 = vmul.f32 %v782_v54, %v461_v50 }
 0x2f6   :  { %v470_v57 = vmul.f32 %v776_v43, %v468_v55  ;;  %v467_v58 = vsub.f32 2.0, %v465_v56 }
 0x2f8   :  { %620 = vst.msk [vmem:[#allocation4] sm:$0xff] %vm291_vm2, %v470_v57  ;;  %v469_v59 = vmul.f32 %v782_v54, %v467_v58  ;;  %738 = vmatmul.mubr.msk.f32.vlgmr.msra.gmra.mrb[4].mxu0 %vm291_vm2, %v470_v57 }
 0x2fa   :  { %v471_v60 = vmul.f32 %v778_v45, %v469_v59 }
 0x2fc   :  { %621 = vst.msk [vmem:[#allocation4 + $0x8] sm:$0xff] %vm291_vm2, %v471_v60  ;;  %743 = vmatmul.mubr.msk.f32.vlgmr.msra.gmra.mrb[6].mxu1 %vm291_vm2, %v471_v60 }
 0x2fd   :  { %794 = shalt.err (!%p791_p4)
}
 0x2fe   :  { %s795_s13 = scalar_lea.hbm %s986_s7, 256 }
 0x2ff   :  { %p796_p5 = scmp.ne.s32.totalorder %s986_s7, %s795_s13  ;;  %p799_p6 = scmp.lt.u32.totalorder %s795_s13, %s986_s7 }
 0x301   :  { %p801_p7 = pnand %p799_p6, %p796_p5 }
 0x303   :  { %804 = shalt.err (!%p801_p7)
}
 0x304   :  { %s834_s18 = smov 128   ;;  %s835_s19 = smov 8  }
 0x305   :  { %645 = dma.vmem_to_hbm [thread:$0]  %s640_s5, 256, %s986_s7, [#allocation5], %s834_s18, %s834_s18, %s835_s19  }
 0x306   :  { %s836_s20 = smov [#allocation2]  }
 0x307   :  { %s627_s21 = sshll.u32 %s836_s20, 4  ;;  %s628_s21 = int_to_ptr.vmem [resolvable:$true] %s627_s21 }
 0x308   :  { %s805_s22 = scalar_lea.vmem %s628_s21, 256  ;;  %p810_p9 = scmp.lt.s32.totalorder %s628_s21, %s628_s21 }
 0x309   :  { %p806_p8 = scmp.ne.s32.totalorder %s628_s21, %s805_s22  ;;  %p811_p10 = scmp.lt.s32.totalorder %s805_s22, %s805_s22 }
 0x30b   :  { %p812_p11 = por %p811_p10, %p810_p9 }
 0x30d   :  { %p813_p12 = pnand %p812_p11, %p806_p8 }
 0x3cb   :  { %v541_v61 = vpop.f32.mrb[4].mxu0 }
 0x3cc   :  { %618 = vst.msk [vmem:[#allocation2] sm:$0xff] %vm291_vm2, %v541_v61  ;;  %v739_v62 = vpop.f32.mrb[5].mxu0 }
 0x3cf   :  { %v614_v63 = vpop.f32.mrb[6].mxu1 }
 0x3d0   :  { %619 = vst.msk [vmem:[#allocation2 + $0x8] sm:$0xff] %vm291_vm2, %v614_v63  ;;  %v744_v0 = vpop.f32.mrb[7].mxu1 }
 0x3d1   :  { %816 = shalt.err (!%p813_p12)
}
 0x3d2   :  { %s817_s1 = scalar_lea.hbm %s985_s6, 256 }
 0x3d3   :  { %p818_p13 = scmp.ne.s32.totalorder %s985_s6, %s817_s1  ;;  %p821_p0 = scmp.lt.u32.totalorder %s817_s1, %s985_s6 }
 0x3d5   :  { %p823_p1 = pnand %p821_p0, %p818_p13 }
 0x3d7   :  { %826 = shalt.err (!%p823_p1)
}
 0x3d8   :  { %633 = dma.vmem_to_hbm [thread:$0]  %s628_s21, 256, %s985_s6, [#allocation3], %s834_s18, %s834_s18, %s835_s19  }
 0x3d9   :  { %827 = dma.done.wait [#allocation3], 256  }
 0x3da   :  { %828 = vsyncadd [#allocation3], 4294967040 }
 0x3db   :  { %829 = dma.done.wait [#allocation5], 256  }
 0x3dc   :  { %830 = vsyncadd [#allocation5], 4294967040 }
 0x3dd   :  { %652 = vsyncpa [#allocation3], 1 }
 0x3de   :  { %653 = vsyncpa [#allocation5], 1 }

</bundles_post_ra>
